<compile_context>
chip_gen: v5e
topology: v5e:2x2
jax: 0.10.0
libtpu: 0.0.40
codegen_flags: <defaults>
</compile_context>

<pallas_src>
import functools

import jax
import jax.numpy as jnp
from jax.experimental import pallas as pl
from jax.experimental.pallas import tpu as pltpu

WEIGHT_LOW = -0.03
WEIGHT_HIGH = 0.03
FC1 = 400
FC2 = 300

LANE = 128
NEG_INF = -1e30


def _round_up(x, m):
    return ((x + m - 1) // m) * m


def _critic_kernel(x_ref, w1_ref, b1_ref, w2_ref, b2_ref, w3_ref, b3_ref,
                   mask_ref, o_ref, *, log):
    # fc1 + ReLU  (single dot: x is the pre-concatenated, K-padded input)
    h1 = jnp.dot(x_ref[...], w1_ref[...],
                 preferred_element_type=jnp.float32) + b1_ref[...]
    h1 = jnp.maximum(h1, 0.0).astype(jnp.bfloat16)

    # fc2 + ReLU
    h2 = jnp.dot(h1, w2_ref[...],
                 preferred_element_type=jnp.float32) + b2_ref[...]
    h2 = jnp.maximum(h2, 0.0).astype(jnp.bfloat16)

    # fc3 + ReLU (matches the PyTorch module: Sequential(Linear, ReLU))
    z = jnp.dot(h2, w3_ref[...],
                preferred_element_type=jnp.float32) + b3_ref[...]
    # Additive mask AFTER the ReLU: 0 for real atoms, -1e30 for padded lanes,
    # so padded lanes cannot leak probability mass into the softmax.
    z = jnp.maximum(z, 0.0) + mask_ref[...]

    m = jnp.max(z, axis=-1, keepdims=True)
    shifted = z - m
    e = jnp.exp(shifted)
    s = jnp.sum(e, axis=-1, keepdims=True)
    if log:
        o_ref[...] = shifted - jnp.log(s)
    else:
        o_ref[...] = e * pl.reciprocal(s, approx=False)


def init_params(key, state_size, action_size, num_atoms):
    """Deterministic uniform(-0.03, 0.03) init, mirroring initialize_weights.

    Weights are stored as [in_features, out_features] (transpose of PyTorch's
    nn.Linear weight), biases as [1, out_features].
    """
    ks = jax.random.split(key, 6)

    def u(k, shape):
        return jax.random.uniform(k, shape, jnp.float32, WEIGHT_LOW, WEIGHT_HIGH)

    in_dim = state_size + action_size
    return {
        "w1": u(ks[0], (in_dim, FC1)), "b1": u(ks[1], (1, FC1)),
        "w2": u(ks[2], (FC1, FC2)),    "b2": u(ks[3], (1, FC2)),
        "w3": u(ks[4], (FC2, num_atoms)), "b3": u(ks[5], (1, num_atoms)),
    }


def prepare_params(params):
    """One-time prep: zero-pad to MXU/lane-friendly shapes, cast matmul
    operands to bf16, build the padded-atom additive mask."""
    in_dim, fc1 = params["w1"].shape
    fc2, num_atoms = params["w3"].shape

    k_pad = _round_up(in_dim, 32)          # concat(state, action) K
    fc1_pad = _round_up(fc1, LANE)         # 400 -> 512
    fc2_pad = _round_up(fc2, LANE)         # 300 -> 384
    na_pad = _round_up(num_atoms, LANE)    # 51  -> 128

    w1 = jnp.pad(params["w1"], ((0, k_pad - in_dim), (0, fc1_pad - fc1)))
    b1 = jnp.pad(params["b1"], ((0, 0), (0, fc1_pad - fc1)))
    w2 = jnp.pad(params["w2"], ((0, fc1_pad - fc1), (0, fc2_pad - fc2)))
    b2 = jnp.pad(params["b2"], ((0, 0), (0, fc2_pad - fc2)))
    w3 = jnp.pad(params["w3"], ((0, fc2_pad - fc2), (0, na_pad - num_atoms)))
    b3 = jnp.pad(params["b3"], ((0, 0), (0, na_pad - num_atoms)))

    mask = jnp.where(jnp.arange(na_pad) < num_atoms, 0.0, NEG_INF)
    mask = mask.reshape(1, na_pad).astype(jnp.float32)

    return {
        "w1": w1.astype(jnp.bfloat16), "b1": b1.astype(jnp.float32),
        "w2": w2.astype(jnp.bfloat16), "b2": b2.astype(jnp.float32),
        "w3": w3.astype(jnp.bfloat16), "b3": b3.astype(jnp.float32),
        "mask": mask,
        "in_dim": int(in_dim),
        "num_atoms": int(num_atoms),
    }


def d4pg_critic_forward(state, action, prep, log=False, block_m=256,
                        return_padded=False):
    """prep: output of prepare_params. Returns [batch, num_atoms] (log-)probs,
    or the lane/batch-padded [batch_p, 128] array if return_padded=True."""
    batch = state.shape[0]
    in_dim = state.shape[1] + action.shape[1]
    assert in_dim == prep["in_dim"]

    k_pad = prep["w1"].shape[0]
    fc1 = prep["w2"].shape[0]
    fc2 = prep["w3"].shape[0]
    na_pad = prep["w3"].shape[1]
    num_atoms = prep["num_atoms"]

    # Batch tile: multiple of 16 (bf16 sublane pack), capped at block_m, and
    # chosen so the grid has >= 2 steps whenever batch > 16 (v7x dual TCs +
    # output-writeback overlap with compute of the next step).
    tm = max(16, min(block_m, _round_up((batch + 1) // 2, 16)))
    batch_p = _round_up(batch, tm)
    grid = (batch_p // tm,)

    # Single concat of state/action; pad K -> 32 and batch -> batch_p, cast to
    # bf16 (XLA fuses this into one pass over a 28-column input).
    x = jnp.concatenate([state, action], axis=1)
    if batch_p != batch or k_pad != in_dim:
        x = jnp.pad(x, ((0, batch_p - batch), (0, k_pad - in_dim)))
    x = x.astype(jnp.bfloat16)

    def row_spec(d):
        return pl.BlockSpec((tm, d), lambda i: (i, 0))

    def const_spec(r, c):
        return pl.BlockSpec((r, c), lambda i: (0, 0))   # weights stay resident

    kernel = functools.partial(_critic_kernel, log=log)

    out = pl.pallas_call(
        kernel,
        out_shape=jax.ShapeDtypeStruct((batch_p, na_pad), jnp.float32),
        grid=grid,
        in_specs=[
            row_spec(k_pad),            # x tile (concat(state, action), K-padded)
            const_spec(k_pad, fc1),     # w1  (32, 512)
            const_spec(1, fc1),         # b1
            const_spec(fc1, fc2),       # w2  (512, 384)
            const_spec(1, fc2),         # b2
            const_spec(fc2, na_pad),    # w3  (384, 128)
            const_spec(1, na_pad),      # b3
            const_spec(1, na_pad),      # additive atom-padding mask
        ],
        out_specs=pl.BlockSpec((tm, na_pad), lambda i: (i, 0)),
        compiler_params=pltpu.CompilerParams(
            dimension_semantics=("parallel",),
            vmem_limit_bytes=32 * 1024 * 1024,
        ),
    )(x, prep["w1"], prep["b1"], prep["w2"], prep["b2"],
      prep["w3"], prep["b3"], prep["mask"])

    if return_padded:
        # Skips an extra HBM read+write pass over the output; consumer must
        # slice [:batch, :num_atoms] (padded lanes hold 0 probs / ~-1e30 logs).
        return out
    return out[:batch, :num_atoms]


def _reference(state, action, params, log=False, matmul_dtype=jnp.float32):
    """Pure-JAX reference. matmul_dtype=bf16 mirrors the kernel's precision."""
    def mm(a, b):
        return jnp.dot(a.astype(matmul_dtype), b.astype(matmul_dtype),
                       preferred_element_type=jnp.float32)

    x = jnp.concatenate([state, action], axis=1).astype(jnp.float32)
    h1 = jnp.maximum(mm(x, params["w1"]) + params["b1"], 0.0)
    h2 = jnp.maximum(mm(h1, params["w2"]) + params["b2"], 0.0)
    z = jnp.maximum(mm(h2, params["w3"]) + params["b3"], 0.0)
    return jax.nn.log_softmax(z, -1) if log else jax.nn.softmax(z, -1)


if __name__ == "__main__":
    key = jax.random.PRNGKey(0)
    k_param, k_state, k_action = jax.random.split(key, 3)

    state_size, action_size, num_atoms = 24, 4, 51
    batch = 2

    params = init_params(k_param, state_size, action_size, num_atoms)
    prep = prepare_params(params)

    state = jax.random.normal(k_state, (batch, state_size), jnp.float32)
    action = jax.random.uniform(k_action, (batch, action_size), jnp.float32,
                                -1.0, 1.0)

    # softmax branch
    out = jax.block_until_ready(d4pg_critic_forward(state, action, prep, log=False))
    assert out.shape == (batch, num_atoms)

    ref_bf16 = _reference(state, action, params, log=False, matmul_dtype=jnp.bfloat16)
    ref_f32 = _reference(state, action, params, log=False, matmul_dtype=jnp.float32)
    assert jnp.allclose(out, ref_bf16, atol=1e-4, rtol=1e-3)   # matched precision
    assert jnp.allclose(out, ref_f32, atol=2e-3, rtol=5e-2)    # vs full f32 ref
    assert jnp.allclose(jnp.sum(out, axis=-1), 1.0, atol=1e-5)

    # log_softmax branch
    out_log = jax.block_until_ready(d4pg_critic_forward(state, action, prep, log=True))
    ref_log = _reference(state, action, params, log=True, matmul_dtype=jnp.bfloat16)
    assert jnp.allclose(out_log, ref_log, atol=1e-3, rtol=1e-3)

    # multi-tile grid + batch/atom padding + padded-output fast path
    batch2 = 300
    state2 = jax.random.normal(jax.random.PRNGKey(1), (batch2, state_size), jnp.float32)
    action2 = jax.random.uniform(jax.random.PRNGKey(2), (batch2, action_size),
                                 jnp.float32, -1.0, 1.0)
    out2 = jax.block_until_ready(
        d4pg_critic_forward(state2, action2, prep, log=False, block_m=128))
    ref2 = _reference(state2, action2, params, log=False, matmul_dtype=jnp.bfloat16)
    assert out2.shape == (batch2, num_atoms)
    assert jnp.allclose(out2, ref2, atol=1e-4, rtol=1e-3)
    assert jnp.allclose(jnp.sum(out2, axis=-1), 1.0, atol=1e-5)

    out2_pad = jax.block_until_ready(
        d4pg_critic_forward(state2, action2, prep, log=False, block_m=128,
                            return_padded=True))
    assert jnp.allclose(out2_pad[:batch2, :num_atoms], out2, atol=1e-6)

    print("KERNEL_OK")
</pallas_src>

<mosaic_0001>
module attributes {stable_mosaic.version = 11 : i64} {
  func.func @_critic_kernel(%arg0: i32, %arg1: memref<16x32xbf16, #tpu.memory_space<vmem>>, %arg2: memref<32x512xbf16, #tpu.memory_space<vmem>>, %arg3: memref<1x512xf32, #tpu.memory_space<vmem>>, %arg4: memref<512x384xbf16, #tpu.memory_space<vmem>>, %arg5: memref<1x384xf32, #tpu.memory_space<vmem>>, %arg6: memref<384x128xbf16, #tpu.memory_space<vmem>>, %arg7: memref<1x128xf32, #tpu.memory_space<vmem>>, %arg8: memref<1x128xf32, #tpu.memory_space<vmem>>, %arg9: memref<16x128xf32, #tpu.memory_space<vmem>>) attributes {dimension_semantics = [#tpu.dimension_semantics<parallel>], iteration_bounds = array<i64: 1>, scalar_prefetch = 0 : i64, scratch_operands = 0 : i64, tpu.core_type = #tpu.core_type<tc>, window_params = [{transform_indices = @transform_0, window_bounds = array<i64: 16, 32>}, {pipeline_mode = #tpu.pipeline_mode<synchronous>, transform_indices = @transform_1, window_bounds = array<i64: 32, 512>}, {pipeline_mode = #tpu.pipeline_mode<synchronous>, transform_indices = @transform_2, window_bounds = array<i64: 1, 512>}, {pipeline_mode = #tpu.pipeline_mode<synchronous>, transform_indices = @transform_3, window_bounds = array<i64: 512, 384>}, {pipeline_mode = #tpu.pipeline_mode<synchronous>, transform_indices = @transform_4, window_bounds = array<i64: 1, 384>}, {pipeline_mode = #tpu.pipeline_mode<synchronous>, transform_indices = @transform_5, window_bounds = array<i64: 384, 128>}, {pipeline_mode = #tpu.pipeline_mode<synchronous>, transform_indices = @transform_6, window_bounds = array<i64: 1, 128>}, {pipeline_mode = #tpu.pipeline_mode<synchronous>, transform_indices = @transform_7, window_bounds = array<i64: 1, 128>}, {transform_indices = @transform_8, window_bounds = array<i64: 16, 128>}]} {
    %c0 = arith.constant 0 : index
    %c0_0 = arith.constant 0 : index
    %0 = vector.load %arg1[%c0, %c0_0] : memref<16x32xbf16, #tpu.memory_space<vmem>>, vector<16x32xbf16>
    %c0_1 = arith.constant 0 : index
    %c0_2 = arith.constant 0 : index
    %1 = vector.load %arg2[%c0_1, %c0_2] : memref<32x512xbf16, #tpu.memory_space<vmem>>, vector<32x512xbf16>
    %cst = arith.constant dense<0.000000e+00> : vector<16x512xf32>
    %2 = tpu.matmul %0, %1, %cst {dimension_numbers = #tpu.dot_dimension_numbers<[1], [0], [0], [1], [0, 0, 1, 1], [], []>} : vector<16x32xbf16>, vector<32x512xbf16>, vector<16x512xf32> -> vector<16x512xf32>
    %c0_3 = arith.constant 0 : index
    %c0_4 = arith.constant 0 : index
    %3 = vector.load %arg3[%c0_3, %c0_4] : memref<1x512xf32, #tpu.memory_space<vmem>>, vector<1x512xf32>
    %4 = vector.broadcast %3 : vector<1x512xf32> to vector<16x512xf32>
    %5 = arith.addf %2, %4 : vector<16x512xf32>
    %cst_5 = arith.constant 0.000000e+00 : f32
    %6 = vector.broadcast %cst_5 : f32 to vector<16x512xf32>
    %7 = arith.maximumf %5, %6 : vector<16x512xf32>
    %8 = arith.truncf %7 : vector<16x512xf32> to vector<16x512xbf16>
    %c0_6 = arith.constant 0 : index
    %c0_7 = arith.constant 0 : index
    %9 = vector.load %arg4[%c0_6, %c0_7] : memref<512x384xbf16, #tpu.memory_space<vmem>>, vector<512x384xbf16>
    %cst_8 = arith.constant dense<0.000000e+00> : vector<16x384xf32>
    %10 = tpu.matmul %8, %9, %cst_8 {dimension_numbers = #tpu.dot_dimension_numbers<[1], [0], [0], [1], [0, 0, 1, 1], [], []>} : vector<16x512xbf16>, vector<512x384xbf16>, vector<16x384xf32> -> vector<16x384xf32>
    %c0_9 = arith.constant 0 : index
    %c0_10 = arith.constant 0 : index
    %11 = vector.load %arg5[%c0_9, %c0_10] : memref<1x384xf32, #tpu.memory_space<vmem>>, vector<1x384xf32>
    %12 = vector.broadcast %11 : vector<1x384xf32> to vector<16x384xf32>
    %13 = arith.addf %10, %12 : vector<16x384xf32>
    %cst_11 = arith.constant 0.000000e+00 : f32
    %14 = vector.broadcast %cst_11 : f32 to vector<16x384xf32>
    %15 = arith.maximumf %13, %14 : vector<16x384xf32>
    %16 = arith.truncf %15 : vector<16x384xf32> to vector<16x384xbf16>
    %c0_12 = arith.constant 0 : index
    %c0_13 = arith.constant 0 : index
    %17 = vector.load %arg6[%c0_12, %c0_13] : memref<384x128xbf16, #tpu.memory_space<vmem>>, vector<384x128xbf16>
    %cst_14 = arith.constant dense<0.000000e+00> : vector<16x128xf32>
    %18 = tpu.matmul %16, %17, %cst_14 {dimension_numbers = #tpu.dot_dimension_numbers<[1], [0], [0], [1], [0, 0, 1, 1], [], []>} : vector<16x384xbf16>, vector<384x128xbf16>, vector<16x128xf32> -> vector<16x128xf32>
    %c0_15 = arith.constant 0 : index
    %c0_16 = arith.constant 0 : index
    %19 = vector.load %arg7[%c0_15, %c0_16] : memref<1x128xf32, #tpu.memory_space<vmem>>, vector<1x128xf32>
    %20 = vector.broadcast %19 : vector<1x128xf32> to vector<16x128xf32>
    %21 = arith.addf %18, %20 : vector<16x128xf32>
    %cst_17 = arith.constant 0.000000e+00 : f32
    %22 = vector.broadcast %cst_17 : f32 to vector<16x128xf32>
    %23 = arith.maximumf %21, %22 : vector<16x128xf32>
    %c0_18 = arith.constant 0 : index
    %c0_19 = arith.constant 0 : index
    %24 = vector.load %arg8[%c0_18, %c0_19] : memref<1x128xf32, #tpu.memory_space<vmem>>, vector<1x128xf32>
    %25 = vector.broadcast %24 : vector<1x128xf32> to vector<16x128xf32>
    %26 = arith.addf %23, %25 : vector<16x128xf32>
    %cst_20 = arith.constant dense<0xFF800000> : vector<16xf32>
    %27 = vector.multi_reduction <maximumf>, %26, %cst_20 [1] : vector<16x128xf32> to vector<16xf32>
    %28 = vector.shape_cast %27 : vector<16xf32> to vector<16x1xf32>
    %29 = vector.broadcast %28 : vector<16x1xf32> to vector<16x128xf32>
    %30 = arith.subf %26, %29 : vector<16x128xf32>
    %31 = math.exp %30 : vector<16x128xf32>
    %cst_21 = arith.constant dense<0.000000e+00> : vector<16xf32>
    %32 = vector.multi_reduction <add>, %31, %cst_21 [1] : vector<16x128xf32> to vector<16xf32>
    %33 = vector.shape_cast %32 : vector<16xf32> to vector<16x1xf32>
    %34 = tpu.reciprocal %33 : vector<16x1xf32> -> vector<16x1xf32>
    %35 = vector.broadcast %34 : vector<16x1xf32> to vector<16x128xf32>
    %36 = arith.mulf %31, %35 : vector<16x128xf32>
    %c0_22 = arith.constant 0 : index
    %c0_23 = arith.constant 0 : index
    %37 = vector.load %arg9[%c0_22, %c0_23] : memref<16x128xf32, #tpu.memory_space<vmem>>, vector<16x128xf32>
    tpu.vector_store %arg9[%c0_22, %c0_23], %36 {strides = array<i32>} : memref<16x128xf32, #tpu.memory_space<vmem>>, vector<16x128xf32>,
    return
  }
  func.func @transform_0(%arg0: i32) -> (i32, i32) {
    %c0_i32 = arith.constant 0 : i32
    %c0_i32_0 = arith.constant 0 : i32
    return %arg0, %c0_i32 : i32, i32
  }
  func.func @transform_1(%arg0: i32) -> (i32, i32) {
    %c0_i32 = arith.constant 0 : i32
    %c0_i32_0 = arith.constant 0 : i32
    %c0_i32_1 = arith.constant 0 : i32
    return %c0_i32, %c0_i32_0 : i32, i32
  }
  func.func @transform_2(%arg0: i32) -> (i32, i32) {
    %c0_i32 = arith.constant 0 : i32
    %c0_i32_0 = arith.constant 0 : i32
    %c0_i32_1 = arith.constant 0 : i32
    return %c0_i32, %c0_i32_0 : i32, i32
  }
  func.func @transform_3(%arg0: i32) -> (i32, i32) {
    %c0_i32 = arith.constant 0 : i32
    %c0_i32_0 = arith.constant 0 : i32
    %c0_i32_1 = arith.constant 0 : i32
    return %c0_i32, %c0_i32_0 : i32, i32
  }
  func.func @transform_4(%arg0: i32) -> (i32, i32) {
    %c0_i32 = arith.constant 0 : i32
    %c0_i32_0 = arith.constant 0 : i32
    %c0_i32_1 = arith.constant 0 : i32
    return %c0_i32, %c0_i32_0 : i32, i32
  }
  func.func @transform_5(%arg0: i32) -> (i32, i32) {
    %c0_i32 = arith.constant 0 : i32
    %c0_i32_0 = arith.constant 0 : i32
    %c0_i32_1 = arith.constant 0 : i32
    return %c0_i32, %c0_i32_0 : i32, i32
  }
  func.func @transform_6(%arg0: i32) -> (i32, i32) {
    %c0_i32 = arith.constant 0 : i32
    %c0_i32_0 = arith.constant 0 : i32
    %c0_i32_1 = arith.constant 0 : i32
    return %c0_i32, %c0_i32_0 : i32, i32
  }
  func.func @transform_7(%arg0: i32) -> (i32, i32) {
    %c0_i32 = arith.constant 0 : i32
    %c0_i32_0 = arith.constant 0 : i32
    %c0_i32_1 = arith.constant 0 : i32
    return %c0_i32, %c0_i32_0 : i32, i32
  }
  func.func @transform_8(%arg0: i32) -> (i32, i32) {
    %c0_i32 = arith.constant 0 : i32
    %c0_i32_0 = arith.constant 0 : i32
    return %arg0, %c0_i32 : i32, i32
  }
}

</mosaic_0001>

<bundles_post_ra>
// kernel: tpu_custom_call.1
= control target key start
LH: loop header
LB: loop body
LE: loop exit
PB: predicated region body
PF: predicated region fallthrough
CT: control target
= control target key end

     0   :  { %13 = vsyncpa [#allocation3], 0  ;;  %s2334_s0 = inlined_call_operand.hbm [shape: bf16[16,32], index: 0, kind: input, shape index: {}]   ;;  %s2335_s1 = inlined_call_operand.hbm [shape: bf16[32,512], index: 1, kind: input, shape index: {}]   ;;  %s2336_s2 = inlined_call_operand.hbm [shape: f32[1,512], index: 2, kind: input, shape index: {}]   ;;  %s2337_s3 = inlined_call_operand.hbm [shape: bf16[512,384], index: 3, kind: input, shape index: {}]   ;;  %s2338_s4 = inlined_call_operand.vmem [shape: f32[1,384], index: 4, kind: input, shape index: {}]   ;;  %s2339_s5 = inlined_call_operand.hbm [shape: bf16[384,128], index: 5, kind: input, shape index: {}]   ;;  %s2340_s6 = inlined_call_operand.vmem [shape: f32[1,128], index: 6, kind: input, shape index: {}]   ;;  %s2341_s7 = inlined_call_operand.vmem [shape: f32[1,128], index: 7, kind: input, shape index: {}]   ;;  %s2342_s8 = inlined_call_operand.hbm [shape: f32[16,128], index: 8, kind: output, shape index: {}]  }
   0x1   :  { %14 = vsyncpa [#allocation6], 0 }
   0x2   :  { %15 = vsyncpa [#allocation9], 0  ;;  %s34_s29 = sshll.u32 %s2335_s1, 4  ;;  %s35_s29 = int_to_ptr.hbm [resolvable:$true] %s34_s29 }
   0x3   :  { %16 = vsyncpa [#allocation4], 0  ;;  %s2207_s30 = smov [#allocation5]   ;;  %s58_s12 = sshll.u32 %s2337_s3, 4  ;;  %s59_s12 = int_to_ptr.hbm [resolvable:$true] %s58_s12 }
   0x4   :  { %s36_s9 = sshll.u32 %s2207_s30, 4  ;;  %s2208_s13 = smov 256   ;;  %s37_s9 = int_to_ptr.vmem [resolvable:$true] %s36_s9 }
   0x5   :  { %s2209_s14 = smov 16   ;;  %s2210_s15 = smov [#allocation8]  }
   0x6   :  { %42 = dma.hbm_to_vmem [thread:$0]  %s35_s29, 1024, %s37_s9, [#allocation6], %s2208_s13, %s2208_s13, %s2209_s14  }
   0x7   :  { %s60_s16 = sshll.u32 %s2210_s15, 4  ;;  %s2211_s17 = smov 192   ;;  %s61_s16 = int_to_ptr.vmem [resolvable:$true] %s60_s16 }
   0x8   :  { %s2212_s18 = smov 12   ;;  %s21_s20 = sshll.u32 %s2334_s0, 4  ;;  %s22_s20 = int_to_ptr.hbm [resolvable:$true] %s21_s20 }
   0x9   :  { %66 = dma.hbm_to_vmem [thread:$0]  %s59_s12, 12288, %s61_s16, [#allocation9], %s2211_s17, %s2211_s17, %s2212_s18  }
   0xa   :  { %s2213_s21 = smov [#allocation2]   ;;  %s48_s24 = sshll.u32 %s2336_s2, 4  ;;  %s49_s24 = int_to_ptr.hbm [resolvable:$true] %s48_s24 }
   0xb   :  { %s23_s22 = sshll.u32 %s2213_s21, 4  ;;  %s2214_s25 = smov 64   ;;  %s24_s22 = int_to_ptr.vmem [resolvable:$true] %s23_s22 }
   0xc   :  { %s2215_s26 = smov 4   ;;  %s2216_s27 = smov [#allocation7]  }
   0xd   :  { %29 = dma.hbm_to_vmem [thread:$0]  %s22_s20, 128, %s24_s22, [#allocation3], %s2214_s25, %s2214_s25, %s2215_s26  }
   0xe   :  { %s50_s28 = sshll.u32 %s2216_s27, 4  ;;  %s73_s9 = sshll.u32 %s2339_s5, 4  ;;  %s51_s28 = int_to_ptr.vmem [resolvable:$true] %s50_s28  ;;  %s74_s9 = int_to_ptr.hbm [resolvable:$true] %s73_s9 }
   0xf   :  { %53 = dma.hbm_to_vmem [thread:$0]  %s49_s24, 64, %s51_s28, [#allocation6]  }
  0x10   :  { %s2217_s0 = smov [#allocation10]  }
  0x11   :  { %s75_s10 = sshll.u32 %s2217_s0, 4  ;;  %s76_s10 = int_to_ptr.vmem [resolvable:$true] %s75_s10 }
  0x12   :  { %81 = dma.hbm_to_vmem [thread:$0]  %s74_s9, 3072, %s76_s10, [#allocation9], %s2214_s25, %s2214_s25, %s2215_s26  }
  0x13   :  { %2199 = dma.done.wait [#allocation3], 128  }
  0x14   :  { %2200 = vsyncadd [#allocation3], 4294967168 }
  0x15   :  { %2201 = dma.done.wait [#allocation6], 1088  }
  0x16   :  { %2202 = vsyncadd [#allocation6], 4294966208 }
  0x17   :  { %2203 = dma.done.wait [#allocation9], 15360  }
  0x18   :  { %2204 = vsyncadd [#allocation9], 4294951936  ;;  %v1404_v0 = vld [vmem:[#allocation5 + $0x20] sm:$0xf]  ;;  %v1909_v1 = vld [vmem:[#allocation5 + $0x2c] sm:$0xf0] }
  0x19   :  { %v1907_v2 = vld [vmem:[#allocation5 + $0x24] sm:$0xf]  ;;  %v1405_v3 = vor.u32 %v1909_v1, %v1404_v0  ;;  %v1406_v4 = vld [vmem:[#allocation5 + $0x30] sm:$0xf0]  ;;  %v1412_v5 = vld [vmem:[#allocation5 + $0x28] sm:$0xf] }
  0x1a   :  { %v1910_v6 = vld [vmem:[#allocation5 + $0x34] sm:$0xf0]  ;;  %v1409_v7 = vor.u32 %v1907_v2, %v1406_v4  ;;  %v1388_v9 = vld [vmem:[#allocation5] sm:$0xf]  ;;  %v1905_v10 = vld [vmem:[#allocation5 + $0xc] sm:$0xf0] }
  0x1b   :  { %v1413_v8 = vor.u32 %v1910_v6, %v1412_v5  ;;  %v1903_v11 = vld [vmem:[#allocation5 + $0x4] sm:$0xf]  ;;  %182 = vmatpush.bf16.msra.mxu3 %v1405_v3  ;;  %v1389_v12 = vor.u32 %v1905_v10, %v1388_v9  ;;  %v1390_v13 = vld [vmem:[#allocation5 + $0x10] sm:$0xf0]  ;;  %v1396_v14 = vld [vmem:[#allocation5 + $0x8] sm:$0xf] }
  0x1c   :  { %v1906_v15 = vld [vmem:[#allocation5 + $0x14] sm:$0xf0]  ;;  %196 = vmatpush.bf16.msra.mxu1 %v1409_v7  ;;  %v1393_v16 = vor.u32 %v1903_v11, %v1390_v13  ;;  %vm172_vm0 = vcmask 261120   ;;  %v1908_v19 = vld [vmem:[#allocation5 + $0x2c] sm:$0xf]  ;;  %s1367_s16 = sshll.u32 %s2342_s8, 4  ;;  %s1368_s16 = int_to_ptr.hbm [resolvable:$true] %s1367_s16 }
  0x1d   :  { %210 = vmatpush.bf16.msra.mxu2 %v1413_v8  ;;  %v1397_v17 = vor.u32 %v1906_v15, %v1396_v14  ;;  %v2281_v18 = vld [vmem:[#allocation2] sm:$0xff]  ;;  %v1904_v22 = vld [vmem:[#allocation5 + $0xc] sm:$0xf]  ;;  %v1592_v26 = vld [vmem:[#allocation8 + $0x150] sm:$0xf]  ;;  %s2219_s17 = smov 128  }
  0x1e   :  { %v1414_v20 = vld [vmem:[#allocation5 + $0x38] sm:$0xf0]  ;;  %v1604_v24 = vld [vmem:[#allocation8 + $0x168] sm:$0xf]  ;;  %v1957_v25 = vld [vmem:[#allocation8 + $0x170] sm:$0xf0] }
  0x1f   :  { %v1417_v21 = vor.u32 %v1908_v19, %v1414_v20  ;;  %v1398_v23 = vld [vmem:[#allocation5 + $0x18] sm:$0xf0]  ;;  %v1954_v27 = vld [vmem:[#allocation8 + $0x158] sm:$0xf0]  ;;  %183 = vmatpush.bf16.msra.mxu3 %v1389_v12  ;;  %v1605_v28 = vor.u32 %v1957_v25, %v1604_v24  ;;  %v1508_v29 = vld [vmem:[#allocation8 + $0xa8] sm:$0xf] }
  0x20   :  { %v1933_v30 = vld [vmem:[#allocation8 + $0xb0] sm:$0xf0]  ;;  %v1700_v31 = vld [vmem:[#allocation8 + $0x228] sm:$0xf]  ;;  %197 = vmatpush.bf16.msra.mxu1 %v1393_v16  ;;  %v1401_v34 = vor.u32 %v1904_v22, %v1398_v23  ;;  %v1593_v35 = vor.u32 %v1954_v27, %v1592_v26  ;;  %v1496_v37 = vld [vmem:[#allocation8 + $0x90] sm:$0xf] }
  0x21   :  { %211 = vmatpush.bf16.msra.mxu2 %v1397_v17  ;;  %v1509_v32 = vor.u32 %v1933_v30, %v1508_v29  ;;  %v1981_v33 = vld [vmem:[#allocation8 + $0x230] sm:$0xf0]  ;;  %v1930_v38 = vld [vmem:[#allocation8 + $0x98] sm:$0xf0]  ;;  %v1688_v39 = vld [vmem:[#allocation8 + $0x210] sm:$0xf] }
  0x22   :  { %v1701_v36 = vor.u32 %v1981_v33, %v1700_v31  ;;  %1418 = vmatmul.msk.bf16.vlgmr.msra.gmra.mxu3 %vm172_vm0, %v2281_v18  ;;  %v1580_v40 = vld [vmem:[#allocation8 + $0x138] sm:$0xf]  ;;  %v1951_v41 = vld [vmem:[#allocation8 + $0x140] sm:$0xf0]  ;;  %v1497_v42 = vor.u32 %v1930_v38, %v1496_v37  ;;  %v1978_v43 = vld [vmem:[#allocation8 + $0x218] sm:$0xf0] }
  0x23   :  { %224 = vmatpush.bf16.msrb.mxu3 %v1417_v21  ;;  %892 = vmatpush.bf16.msra.mxu0 %v1509_v32  ;;  %v1484_v44 = vld [vmem:[#allocation8 + $0x78] sm:$0xf]  ;;  %v1927_v45 = vld [vmem:[#allocation8 + $0x80] sm:$0xf0]  ;;  %v1689_v46 = vor.u32 %v1978_v43, %v1688_v39  ;;  %v1581_v47 = vor.u32 %v1951_v41, %v1580_v40  ;;  %v1568_v50 = vld [vmem:[#allocation8 + $0x120] sm:$0xf] }
  0x24   :  { %906 = vmatpush.bf16.msrb.mxu1 %v1605_v28  ;;  %1420 = vmatmul.msk.bf16.vlgmr.msra.gmra.mxu2 %vm172_vm0, %v2281_v18  ;;  %v1676_v48 = vld [vmem:[#allocation8 + $0x1f8] sm:$0xf]  ;;  %v1975_v49 = vld [vmem:[#allocation8 + $0x200] sm:$0xf0]  ;;  %v1948_v51 = vld [vmem:[#allocation8 + $0x128] sm:$0xf0]  ;;  %v1485_v52 = vor.u32 %v1927_v45, %v1484_v44 }
  0x25   :  { %1419 = vmatmul.msk.bf16.vlgmr.msra.gmra.mxu1 %vm172_vm0, %v2281_v18  ;;  %920 = vmatpush.bf16.msrb.mxu2 %v1701_v36  ;;  %v1472_v53 = vld [vmem:[#allocation8 + $0x60] sm:$0xf]  ;;  %v1924_v54 = vld [vmem:[#allocation8 + $0x68] sm:$0xf0]  ;;  %v1677_v55 = vor.u32 %v1975_v49, %v1676_v48  ;;  %v1796_v56 = vld [vmem:[#allocation8 + $0x2e8] sm:$0xf]  ;;  %v1569_v58 = vor.u32 %v1948_v51, %v1568_v50 }
  0x26   :  { %v2005_v57 = vld [vmem:[#allocation8 + $0x2f0] sm:$0xf0]  ;;  %v1664_v59 = vld [vmem:[#allocation8 + $0x1e0] sm:$0xf]  ;;  %v1972_v60 = vld [vmem:[#allocation8 + $0x1e8] sm:$0xf0]  ;;  %v1473_v0 = vor.u32 %v1924_v54, %v1472_v53 }
  0x27   :  { %225 = vmatpush.bf16.msrb.mxu3 %v1401_v34  ;;  %893 = vmatpush.bf16.msra.mxu0 %v1497_v42  ;;  %v1797_v61 = vor.u32 %v2005_v57, %v1796_v56  ;;  %v1556_v62 = vld [vmem:[#allocation8 + $0x108] sm:$0xf]  ;;  %v1945_v63 = vld [vmem:[#allocation8 + $0x110] sm:$0xf0]  ;;  %v1784_v3 = vld [vmem:[#allocation8 + $0x2d0] sm:$0xf]  ;;  %v1665_v5 = vor.u32 %v1972_v60, %v1664_v59 }
  0x28   :  { %907 = vmatpush.bf16.msrb.mxu1 %v1593_v35  ;;  %v1460_v1 = vld [vmem:[#allocation8 + $0x48] sm:$0xf]  ;;  %v1921_v2 = vld [vmem:[#allocation8 + $0x50] sm:$0xf0]  ;;  %v2002_v4 = vld [vmem:[#allocation8 + $0x2d8] sm:$0xf0]  ;;  %v1557_v7 = vor.u32 %v1945_v63, %v1556_v62 }
  0x29   :  { %921 = vmatpush.bf16.msrb.mxu2 %v1689_v46  ;;  %v1785_v6 = vor.u32 %v2002_v4, %v1784_v3  ;;  %v1544_v8 = vld [vmem:[#allocation8 + $0xf0] sm:$0xf]  ;;  %v1652_v9 = vld [vmem:[#allocation8 + $0x1c8] sm:$0xf]  ;;  %v1969_v10 = vld [vmem:[#allocation8 + $0x1d0] sm:$0xf0]  ;;  %v1461_v12 = vor.u32 %v1921_v2, %v1460_v1 }
  0x2a   :  { %v1942_v11 = vld [vmem:[#allocation8 + $0xf8] sm:$0xf0]  ;;  %v1772_v13 = vld [vmem:[#allocation8 + $0x2b8] sm:$0xf]  ;;  %v1999_v14 = vld [vmem:[#allocation8 + $0x2c0] sm:$0xf0]  ;;  %v1653_v19 = vor.u32 %v1969_v10, %v1652_v9 }
  0x2b   :  { %894 = vmatpush.bf16.msra.mxu0 %v1485_v52  ;;  %934 = vmatpush.bf16.msra.mxu3 %v1797_v61  ;;  %v1448_v15 = vld [vmem:[#allocation8 + $0x30] sm:$0xf]  ;;  %v1918_v16 = vld [vmem:[#allocation8 + $0x38] sm:$0xf0]  ;;  %v1773_v17 = vor.u32 %v1999_v14, %v1772_v13  ;;  %v1545_v21 = vor.u32 %v1942_v11, %v1544_v8  ;;  %v1760_v23 = vld [vmem:[#allocation8 + $0x2a0] sm:$0xf] }
  0x2c   :  { %908 = vmatpush.bf16.msrb.mxu1 %v1581_v47  ;;  %v1640_v20 = vld [vmem:[#allocation8 + $0x1b0] sm:$0xf]  ;;  %v1966_v22 = vld [vmem:[#allocation8 + $0x1b8] sm:$0xf0]  ;;  %v1996_v24 = vld [vmem:[#allocation8 + $0x2a8] sm:$0xf0]  ;;  %v1449_v27 = vor.u32 %v1918_v16, %v1448_v15 }
  0x2d   :  { %922 = vmatpush.bf16.msrb.mxu2 %v1677_v55  ;;  %v1532_v25 = vld [vmem:[#allocation8 + $0xd8] sm:$0xf]  ;;  %v1939_v26 = vld [vmem:[#allocation8 + $0xe0] sm:$0xf0]  ;;  %v1761_v30 = vor.u32 %v1996_v24, %v1760_v23  ;;  %v1641_v31 = vor.u32 %v1966_v22, %v1640_v20  ;;  %v1520_v32 = vld [vmem:[#allocation8 + $0xc0] sm:$0xf] }
  0x2e   :  { %v1436_v28 = vld [vmem:[#allocation8 + $0x18] sm:$0xf]  ;;  %v1915_v29 = vld [vmem:[#allocation8 + $0x20] sm:$0xf0]  ;;  %v1748_v33 = vld [vmem:[#allocation8 + $0x288] sm:$0xf]  ;;  %v1533_v35 = vor.u32 %v1939_v26, %v1532_v25 }
  0x2f   :  { %895 = vmatpush.bf16.msra.mxu0 %v1473_v0  ;;  %935 = vmatpush.bf16.msra.mxu3 %v1785_v6  ;;  %v1993_v34 = vld [vmem:[#allocation8 + $0x290] sm:$0xf0]  ;;  %v1936_v36 = vld [vmem:[#allocation8 + $0xc8] sm:$0xf0]  ;;  %v1628_v37 = vld [vmem:[#allocation8 + $0x198] sm:$0xf]  ;;  %v1437_v40 = vor.u32 %v1915_v29, %v1436_v28 }
  0x30   :  { %909 = vmatpush.bf16.msrb.mxu1 %v1569_v58  ;;  %v1963_v38 = vld [vmem:[#allocation8 + $0x1a0] sm:$0xf0]  ;;  %v1606_v39 = vld [vmem:[#allocation8 + $0x174] sm:$0xf0]  ;;  %v1424_v41 = vld [vmem:[#allocation8] sm:$0xf]  ;;  %v1749_v43 = vor.u32 %v1993_v34, %v1748_v33  ;;  %v1521_v47 = vor.u32 %v1936_v36, %v1520_v32 }
  0x31   :  { %923 = vmatpush.bf16.msrb.mxu2 %v1665_v5  ;;  %v1912_v42 = vld [vmem:[#allocation8 + $0x8] sm:$0xf0]  ;;  %v1629_v44 = vor.u32 %v1963_v38, %v1628_v37  ;;  %v1510_v46 = vld [vmem:[#allocation8 + $0xb4] sm:$0xf0]  ;;  %v1616_v48 = vld [vmem:[#allocation8 + $0x180] sm:$0xf] }
  0x32   :  { %1421 = vmatmul.msk.bf16.vlgmr.msrb.gmra.mxu3 %vm172_vm0, %v2281_v18  ;;  %v1956_v18 = vld [vmem:[#allocation8 + $0x16c] sm:$0xf]  ;;  %v1425_v51 = vor.u32 %v1912_v42, %v1424_v41  ;;  %v1702_v53 = vld [vmem:[#allocation8 + $0x234] sm:$0xf0]  ;;  %v1953_v54 = vld [vmem:[#allocation8 + $0x154] sm:$0xf] }
  0x33   :  { %896 = vmatpush.bf16.msra.mxu0 %v1461_v12  ;;  %936 = vmatpush.bf16.msra.mxu3 %v1773_v17  ;;  %v1932_v45 = vld [vmem:[#allocation8 + $0xac] sm:$0xf]  ;;  %v1609_v50 = vor.u32 %v1956_v18, %v1606_v39  ;;  %v1594_v55 = vld [vmem:[#allocation8 + $0x15c] sm:$0xf0]  ;;  %v1929_v58 = vld [vmem:[#allocation8 + $0x94] sm:$0xf] }
  0x34   :  { %910 = vmatpush.bf16.msrb.mxu1 %v1557_v7  ;;  %v1960_v49 = vld [vmem:[#allocation8 + $0x188] sm:$0xf0]  ;;  %v1513_v56 = vor.u32 %v1932_v45, %v1510_v46  ;;  %v1498_v59 = vld [vmem:[#allocation8 + $0x9c] sm:$0xf0]  ;;  %v1597_v61 = vor.u32 %v1953_v54, %v1594_v55  ;;  %v1977_v62 = vld [vmem:[#allocation8 + $0x214] sm:$0xf] }
  0x35   :  { %924 = vmatpush.bf16.msrb.mxu2 %v1653_v19  ;;  %v1980_v52 = vld [vmem:[#allocation8 + $0x22c] sm:$0xf]  ;;  %v1617_v57 = vor.u32 %v1960_v49, %v1616_v48  ;;  %v1690_v63 = vld [vmem:[#allocation8 + $0x21c] sm:$0xf0]  ;;  %v1950_v0 = vld [vmem:[#allocation8 + $0x13c] sm:$0xf]  ;;  %v1501_v2 = vor.u32 %v1929_v58, %v1498_v59 }
  0x36   :  { %v1705_v60 = vor.u32 %v1980_v52, %v1702_v53  ;;  %v1582_v1 = vld [vmem:[#allocation8 + $0x144] sm:$0xf0]  ;;  %v1693_v3 = vor.u32 %v1977_v62, %v1690_v63  ;;  %v1947_v5 = vld [vmem:[#allocation8 + $0x124] sm:$0xf]  ;;  %v1570_v6 = vld [vmem:[#allocation8 + $0x12c] sm:$0xf0] }
  0x37   :  { %897 = vmatpush.bf16.msra.mxu0 %v1449_v27  ;;  %937 = vmatpush.bf16.msra.mxu3 %v1761_v30  ;;  %v1585_v4 = vor.u32 %v1950_v0, %v1582_v1  ;;  %v1573_v7 = vor.u32 %v1947_v5, %v1570_v6  ;;  %v1736_v8 = vld [vmem:[#allocation8 + $0x270] sm:$0xf]  ;;  %v1990_v9 = vld [vmem:[#allocation8 + $0x278] sm:$0xf0]  ;;  %v1486_v12 = vld [vmem:[#allocation8 + $0x84] sm:$0xf0] }
  0x38   :  { %911 = vmatpush.bf16.msrb.mxu1 %v1545_v21  ;;  %v1737_v10 = vor.u32 %v1990_v9, %v1736_v8  ;;  %v1926_v11 = vld [vmem:[#allocation8 + $0x7c] sm:$0xf]  ;;  %v1678_v15 = vld [vmem:[#allocation8 + $0x204] sm:$0xf0]  ;;  %v1944_v17 = vld [vmem:[#allocation8 + $0x10c] sm:$0xf] }
  0x39   :  { %925 = vmatpush.bf16.msrb.mxu2 %v1641_v31  ;;  %v1974_v13 = vld [vmem:[#allocation8 + $0x1fc] sm:$0xf]  ;;  %v1489_v14 = vor.u32 %v1926_v11, %v1486_v12  ;;  %v1558_v19 = vld [vmem:[#allocation8 + $0x114] sm:$0xf0]  ;;  %v1987_v22 = vld [vmem:[#allocation8 + $0x260] sm:$0xf0] }
  0x3a   :  { %v1681_v16 = vor.u32 %v1974_v13, %v1678_v15  ;;  %v1561_v20 = vor.u32 %v1944_v17, %v1558_v19  ;;  %v1724_v21 = vld [vmem:[#allocation8 + $0x258] sm:$0xf]  ;;  %v1923_v24 = vld [vmem:[#allocation8 + $0x64] sm:$0xf]  ;;  %v1474_v25 = vld [vmem:[#allocation8 + $0x6c] sm:$0xf0] }
  0x3b   :  { %898 = vmatpush.bf16.msra.mxu0 %v1437_v40  ;;  %938 = vmatpush.bf16.msra.mxu3 %v1749_v43  ;;  %v1725_v23 = vor.u32 %v1987_v22, %v1724_v21  ;;  %v1971_v26 = vld [vmem:[#allocation8 + $0x1e4] sm:$0xf]  ;;  %v1477_v27 = vor.u32 %v1923_v24, %v1474_v25  ;;  %v1666_v28 = vld [vmem:[#allocation8 + $0x1ec] sm:$0xf0]  ;;  %v1941_v30 = vld [vmem:[#allocation8 + $0xf4] sm:$0xf] }
  0x3c   :  { %912 = vmatpush.bf16.msrb.mxu1 %v1533_v35  ;;  %v1669_v29 = vor.u32 %v1971_v26, %v1666_v28  ;;  %v1546_v31 = vld [vmem:[#allocation8 + $0xfc] sm:$0xf0]  ;;  %v1984_v34 = vld [vmem:[#allocation8 + $0x248] sm:$0xf0]  ;;  %v1462_v37 = vld [vmem:[#allocation8 + $0x54] sm:$0xf0] }
  0x3d   :  { %926 = vmatpush.bf16.msrb.mxu2 %v1629_v44  ;;  %v1549_v32 = vor.u32 %v1941_v30, %v1546_v31  ;;  %v1712_v33 = vld [vmem:[#allocation8 + $0x240] sm:$0xf]  ;;  %v1920_v36 = vld [vmem:[#allocation8 + $0x4c] sm:$0xf]  ;;  %v1654_v39 = vld [vmem:[#allocation8 + $0x1d4] sm:$0xf0] }
  0x3e   :  { %v1713_v35 = vor.u32 %v1984_v34, %v1712_v33  ;;  %v1968_v38 = vld [vmem:[#allocation8 + $0x1cc] sm:$0xf]  ;;  %v1465_v18 = vor.u32 %v1920_v36, %v1462_v37  ;;  %v1798_v41 = vld [vmem:[#allocation8 + $0x2f4] sm:$0xf0]  ;;  %v1938_v44 = vld [vmem:[#allocation8 + $0xdc] sm:$0xf] }
  0x3f   :  { %899 = vmatpush.bf16.msra.mxu0 %v1425_v51  ;;  %939 = vmatpush.bf16.msra.mxu3 %v1737_v10  ;;  %v2004_v40 = vld [vmem:[#allocation8 + $0x2ec] sm:$0xf]  ;;  %v1657_v42 = vor.u32 %v1968_v38, %v1654_v39  ;;  %v1534_v45 = vld [vmem:[#allocation8 + $0xe4] sm:$0xf0]  ;;  %v1450_v48 = vld [vmem:[#allocation8 + $0x3c] sm:$0xf0] }
  0x40   :  { %913 = vmatpush.bf16.msrb.mxu1 %v1521_v47  ;;  %v1801_v43 = vor.u32 %v2004_v40, %v1798_v41  ;;  %v1537_v46 = vor.u32 %v1938_v44, %v1534_v45  ;;  %v1917_v47 = vld [vmem:[#allocation8 + $0x34] sm:$0xf]  ;;  %v1642_v51 = vld [vmem:[#allocation8 + $0x1bc] sm:$0xf0]  ;;  %v1914_v59 = vld [vmem:[#allocation8 + $0x1c] sm:$0xf] }
  0x41   :  { %927 = vmatpush.bf16.msrb.mxu2 %v1617_v57  ;;  %v1965_v49 = vld [vmem:[#allocation8 + $0x1b4] sm:$0xf]  ;;  %v1786_v53 = vld [vmem:[#allocation8 + $0x2dc] sm:$0xf0]  ;;  %v1522_v57 = vld [vmem:[#allocation8 + $0xcc] sm:$0xf0] }
  0x42   :  { %v2001_v52 = vld [vmem:[#allocation8 + $0x2d4] sm:$0xf]  ;;  %v1645_v54 = vor.u32 %v1965_v49, %v1642_v51  ;;  %v1630_v63 = vld [vmem:[#allocation8 + $0x1a4] sm:$0xf0]  ;;  %v1998_v0 = vld [vmem:[#allocation8 + $0x2bc] sm:$0xf] }
  0x43   :  { %948 = vmatpush.bf16.msrb.mxu0 %v1513_v56  ;;  %940 = vmatpush.bf16.msra.mxu3 %v1725_v23  ;;  %v1789_v55 = vor.u32 %v2001_v52, %v1786_v53  ;;  %v1935_v56 = vld [vmem:[#allocation8 + $0xc4] sm:$0xf]  ;;  %v1774_v1 = vld [vmem:[#allocation8 + $0x2c4] sm:$0xf0]  ;;  %v1426_v5 = vld [vmem:[#allocation8 + $0xc] sm:$0xf0] }
  0x44   :  { %962 = vmatpush.bf16.msra.mxu1 %v1609_v50  ;;  %v1453_v50 = vor.u32 %v1917_v47, %v1450_v48  ;;  %v1525_v58 = vor.u32 %v1935_v56, %v1522_v57  ;;  %v1959_v6 = vld [vmem:[#allocation8 + $0x184] sm:$0xf]  ;;  %v1618_v8 = vld [vmem:[#allocation8 + $0x18c] sm:$0xf0]  ;;  %v1992_v13 = vld [vmem:[#allocation8 + $0x28c] sm:$0xf] }
  0x45   :  { %976 = vmatpush.bf16.msra.mxu2 %v1705_v60  ;;  %v1438_v60 = vld [vmem:[#allocation8 + $0x24] sm:$0xf0]  ;;  %v1995_v9 = vld [vmem:[#allocation8 + $0x2a4] sm:$0xf]  ;;  %v1762_v10 = vld [vmem:[#allocation8 + $0x2ac] sm:$0xf0]  ;;  %v1621_v11 = vor.u32 %v1959_v6, %v1618_v8 }
  0x46   :  { %v1441_v62 = vor.u32 %v1914_v59, %v1438_v60  ;;  %v1765_v12 = vor.u32 %v1995_v9, %v1762_v10  ;;  %v1738_v17 = vld [vmem:[#allocation8 + $0x27c] sm:$0xf0]  ;;  %v1726_v21 = vld [vmem:[#allocation8 + $0x264] sm:$0xf0]  ;;  %v2291_v23 = vld [vmem:[#allocation7] sm:$0xf] }
  0x47   :  { %949 = vmatpush.bf16.msrb.mxu0 %v1501_v2  ;;  %941 = vmatpush.bf16.msra.mxu3 %v1713_v35  ;;  %v120_v25 = vperm.slane %v2291_v23, 1  ;;  %v1983_v26 = vld [vmem:[#allocation8 + $0x244] sm:$0xf]  ;;  %v119_v33 = vperm.slane %v2291_v23, 0  ;;  %v1612_v37 = vld [vmem:[#allocation8 + $0x170] sm:$0xf] }
  0x48   :  { %963 = vmatpush.bf16.msra.mxu1 %v1597_v61  ;;  %v1962_v61 = vld [vmem:[#allocation8 + $0x19c] sm:$0xf]  ;;  %v1600_v44 = vld [vmem:[#allocation8 + $0x158] sm:$0xf]  ;;  %v1955_v45 = vld [vmem:[#allocation8 + $0x160] sm:$0xf0] }
  0x49   :  { %977 = vmatpush.bf16.msra.mxu2 %v1693_v3  ;;  %v1633_v2 = vor.u32 %v1962_v61, %v1630_v63  ;;  %v1777_v3 = vor.u32 %v1998_v0, %v1774_v1  ;;  %v1958_v38 = vld [vmem:[#allocation8 + $0x178] sm:$0xf0]  ;;  %v1516_v48 = vld [vmem:[#allocation8 + $0xb0] sm:$0xf]  ;;  %v1601_v56 = vor.u32 %v1955_v45, %v1600_v44  ;;  %v1588_v59 = vld [vmem:[#allocation8 + $0x140] sm:$0xf] }
  0x4a   :  { %v1613_v41 = vor.u32 %v1958_v38, %v1612_v37  ;;  %v1934_v49 = vld [vmem:[#allocation8 + $0xb8] sm:$0xf0]  ;;  %v1708_v52 = vld [vmem:[#allocation8 + $0x230] sm:$0xf]  ;;  %v1952_v60 = vld [vmem:[#allocation8 + $0x148] sm:$0xf0] }
  0x4b   :  { %950 = vmatpush.bf16.msrb.mxu0 %v1489_v14  ;;  %990 = vmatpush.bf16.msrb.mxu3 %v1801_v43  ;;  %v1750_v14 = vld [vmem:[#allocation8 + $0x294] sm:$0xf0]  ;;  %v1982_v53 = vld [vmem:[#allocation8 + $0x238] sm:$0xf0]  ;;  %v1931_v0 = vld [vmem:[#allocation8 + $0xa0] sm:$0xf0] }
  0x4c   :  { %964 = vmatpush.bf16.msra.mxu1 %v1585_v4  ;;  %v1911_v4 = vld [vmem:[#allocation8 + $0x4] sm:$0xf]  ;;  %v1753_v15 = vor.u32 %v1992_v13, %v1750_v14  ;;  %v1504_v63 = vld [vmem:[#allocation8 + $0x98] sm:$0xf]  ;;  %v1949_v8 = vld [vmem:[#allocation8 + $0x130] sm:$0xf0] }
  0x4d   :  { %978 = vmatpush.bf16.msra.mxu2 %v1681_v16  ;;  %v1989_v16 = vld [vmem:[#allocation8 + $0x274] sm:$0xf]  ;;  %v1505_v6 = vor.u32 %v1931_v0, %v1504_v63  ;;  %v1492_v10 = vld [vmem:[#allocation8 + $0x80] sm:$0xf]  ;;  %v1976_v13 = vld [vmem:[#allocation8 + $0x208] sm:$0xf0] }
  0x4e   :  { %v1741_v19 = vor.u32 %v1989_v16, %v1738_v17  ;;  %v122_v14 = vperm.slane %v2291_v23, 3  ;;  %v1564_v17 = vld [vmem:[#allocation8 + $0x110] sm:$0xf]  ;;  %v1636_v63 = vld [vmem:[#allocation8 + $0x1a0] sm:$0xf]  ;;  %s2220_s18 = smov 8  }
  0x4f   :  { %951 = vmatpush.bf16.msrb.mxu0 %v1477_v27  ;;  %991 = vmatpush.bf16.msrb.mxu3 %v1789_v55  ;;  %v1714_v27 = vld [vmem:[#allocation8 + $0x24c] sm:$0xf0]  ;;  %v1964_v0 = vld [vmem:[#allocation8 + $0x1a8] sm:$0xf0] }
  0x50   :  { %965 = vmatpush.bf16.msra.mxu1 %v1573_v7  ;;  %v1429_v7 = vor.u32 %v1911_v4, %v1426_v5  ;;  %v1717_v28 = vor.u32 %v1983_v26, %v1714_v27  ;;  %v1589_v4 = vor.u32 %v1952_v60, %v1588_v59  ;;  %v1444_v59 = vld [vmem:[#allocation8 + $0x20] sm:$0xf] }
  0x51   :  { %979 = vmatpush.bf16.msra.mxu2 %v1669_v29 }
  0x53   :  { %952 = vmatpush.bf16.msrb.mxu0 %v1465_v18  ;;  %992 = vmatpush.bf16.msrb.mxu3 %v1777_v3  ;;  %v1979_v3 = vld [vmem:[#allocation8 + $0x220] sm:$0xf0] }
  0x54   :  { %966 = vmatpush.bf16.msra.mxu1 %v1561_v20  ;;  %v1986_v20 = vld [vmem:[#allocation8 + $0x25c] sm:$0xf] }
  0x55   :  { %980 = vmatpush.bf16.msra.mxu2 %v1657_v42  ;;  %v1729_v22 = vor.u32 %v1986_v20, %v1726_v21  ;;  %v1480_v21 = vld [vmem:[#allocation8 + $0x68] sm:$0xf] }
  0x57   :  { %953 = vmatpush.bf16.msrb.mxu0 %v1453_v50  ;;  %993 = vmatpush.bf16.msrb.mxu3 %v1765_v12  ;;  %v1684_v12 = vld [vmem:[#allocation8 + $0x200] sm:$0xf] }
  0x58   :  { %967 = vmatpush.bf16.msra.mxu1 %v1549_v32  ;;  %v121_v32 = vperm.slane %v2291_v23, 2  ;;  %v1685_v20 = vor.u32 %v1976_v13, %v1684_v12  ;;  %v1943_v23 = vld [vmem:[#allocation8 + $0x100] sm:$0xf0]  ;;  %v1768_v12 = vld [vmem:[#allocation8 + $0x2a8] sm:$0xf] }
  0x59   :  { %981 = vmatpush.bf16.msra.mxu2 %v1645_v54  ;;  %v1997_v13 = vld [vmem:[#allocation8 + $0x2b0] sm:$0xf0] }
  0x5b   :  { %954 = vmatpush.bf16.msrb.mxu0 %v1441_v62  ;;  %994 = vmatpush.bf16.msrb.mxu3 %v1753_v15  ;;  %v1709_v62 = vor.u32 %v1982_v53, %v1708_v52  ;;  %v1792_v53 = vld [vmem:[#allocation8 + $0x2d8] sm:$0xf] }
  0x5c   :  { %968 = vmatpush.bf16.msra.mxu1 %v1537_v46 }
  0x5d   :  { %982 = vmatpush.bf16.msra.mxu2 %v1633_v2  ;;  %v1696_v2 = vld [vmem:[#allocation8 + $0x218] sm:$0xf] }
  0x5e   :  { %v1697_v9 = vor.u32 %v1979_v3, %v1696_v2  ;;  %v1780_v3 = vld [vmem:[#allocation8 + $0x2c0] sm:$0xf] }
  0x5f   :  { %955 = vmatpush.bf16.msrb.mxu0 %v1429_v7  ;;  %995 = vmatpush.bf16.msrb.mxu3 %v1741_v19  ;;  %v1576_v7 = vld [vmem:[#allocation8 + $0x128] sm:$0xf]  ;;  %v1946_v19 = vld [vmem:[#allocation8 + $0x118] sm:$0xf0] }
  0x60   :  { %969 = vmatpush.bf16.msra.mxu1 %v1525_v58  ;;  %v1517_v58 = vor.u32 %v1934_v49, %v1516_v48  ;;  %v1577_v15 = vor.u32 %v1949_v8, %v1576_v7  ;;  %v1565_v27 = vor.u32 %v1946_v19, %v1564_v17  ;;  %v1919_v49 = vld [vmem:[#allocation8 + $0x40] sm:$0xf0]  ;;  %v1432_v7 = vld [vmem:[#allocation8 + $0x8] sm:$0xf]  ;;  %v1756_v17 = vld [vmem:[#allocation8 + $0x290] sm:$0xf] }
  0x61   :  { %983 = vmatpush.bf16.msra.mxu2 %v1621_v11  ;;  %v1928_v11 = vld [vmem:[#allocation8 + $0x88] sm:$0xf0]  ;;  %v1994_v19 = vld [vmem:[#allocation8 + $0x298] sm:$0xf0] }
  0x62   :  { %v1493_v16 = vor.u32 %v1928_v11, %v1492_v10  ;;  %v1624_v10 = vld [vmem:[#allocation8 + $0x188] sm:$0xf]  ;;  %v1961_v11 = vld [vmem:[#allocation8 + $0x190] sm:$0xf0] }
  0x63   :  { %996 = vmatpush.bf16.msrb.mxu3 %v1729_v22  ;;  %v1925_v22 = vld [vmem:[#allocation8 + $0x70] sm:$0xf0] }
  0x67   :  { %997 = vmatpush.bf16.msrb.mxu3 %v1717_v28 }
  0xa2   :  { %v199_v24 = vpop.f32.mrf.mxu1 }
  0xa3   :  { %v200_v29 = vadd.f32 %v199_v24, %v120_v25  ;;  %v1672_v24 = vld [vmem:[#allocation8 + $0x1e8] sm:$0xf] }
  0xa5   :  { %v185_v30 = vpop.f32.mrf.mxu3  ;;  %v233_v35 = vmax.f32 %v200_v29, 0.0  ;;  %v1481_v29 = vor.u32 %v1925_v22, %v1480_v21  ;;  %v1744_v21 = vld [vmem:[#allocation8 + $0x278] sm:$0xf]  ;;  %v1991_v22 = vld [vmem:[#allocation8 + $0x280] sm:$0xf0] }
  0xa6   :  { %v186_v40 = vadd.f32 %v185_v30, %v119_v33  ;;  %v1552_v30 = vld [vmem:[#allocation8 + $0xf8] sm:$0xf] }
  0xa7   :  { %v213_v31 = vpop.f32.mrf.mxu2 }
  0xa8   :  { %v214_v18 = vadd.f32 %v213_v31, %v121_v32  ;;  %v232_v54 = vmax.f32 %v186_v40, 0.0  ;;  %v2006_v40 = vld [vmem:[#allocation8 + $0x2f8] sm:$0xf0] }
  0xaa   :  { %v201_v34 = vpop.f32.mrf.mxu1  ;;  %v234_v50 = vmax.f32 %v214_v18, 0.0  ;;  %v1553_v18 = vor.u32 %v1943_v23, %v1552_v30  ;;  %v2014_v30 = vld [vmem:[#allocation10 + $0x38] sm:$0xff]  ;;  %v2013_v23 = vld [vmem:[#allocation10 + $0x30] sm:$0xff] }
  0xab   :  { %v202_v36 = vadd.f32 %v201_v34, %v120_v25  ;;  %v1973_v25 = vld [vmem:[#allocation8 + $0x1f0] sm:$0xf0]  ;;  %v1922_v34 = vld [vmem:[#allocation8 + $0x58] sm:$0xf0] }
  0xad   :  { %v237_v39 = vmax.f32 %v202_v36, 0.0  ;;  %v187_v43 = vpop.f32.mrf.mxu3  ;;  %v1970_v36 = vld [vmem:[#allocation8 + $0x1d8] sm:$0xf0] }
  0xae   :  { %v188_v46 = vadd.f32 %v187_v43, %v119_v33  ;;  %v1468_v33 = vld [vmem:[#allocation8 + $0x50] sm:$0xf]  ;;  %v1940_v43 = vld [vmem:[#allocation8 + $0xe8] sm:$0xf0] }
  0xaf   :  { %v2296_v42 = vpack.c.bf16 %v237_v39, %v233_v35  ;;  %v215_v47 = vpop.f32.mrf.mxu2  ;;  %v1660_v35 = vld [vmem:[#allocation8 + $0x1d0] sm:$0xf]  ;;  %v1469_v45 = vor.u32 %v1922_v34, %v1468_v33 }
  0xb0   :  { %v216_v51 = vadd.f32 %v215_v47, %v121_v32  ;;  %v236_v55 = vmax.f32 %v188_v46, 0.0  ;;  %v1673_v32 = vor.u32 %v1973_v25, %v1672_v24  ;;  %v1804_v39 = vld [vmem:[#allocation8 + $0x2f0] sm:$0xf]  ;;  %v1661_v46 = vor.u32 %v1970_v36, %v1660_v35  ;;  %v1456_v47 = vld [vmem:[#allocation8 + $0x38] sm:$0xf]  ;;  %v2008_v35 = vld [vmem:[#allocation10 + $0x8] sm:$0xff] }
  0xb1   :  { %914 = vmatmul.bf16.vlgmr.msrb.gmra.mxu1 %v2296_v42  ;;  %v1805_v48 = vor.u32 %v2006_v40, %v1804_v39  ;;  %v1745_v24 = vor.u32 %v1991_v22, %v1744_v21  ;;  %v1732_v25 = vld [vmem:[#allocation8 + $0x260] sm:$0xf]  ;;  %v2009_v33 = vld [vmem:[#allocation10 + $0x10] sm:$0xff]  ;;  %v2020_v36 = vld [vmem:[#allocation10 + $0x68] sm:$0xff] }
  0xb2   :  { %1018 = vmatpush.bf16.msrb.mxu1 %v1613_v41  ;;  %v238_v57 = vmax.f32 %v216_v51, 0.0  ;;  %v2299_v61 = vpack.c.bf16 %v236_v55, %v232_v54  ;;  %v1540_v41 = vld [vmem:[#allocation8 + $0xe0] sm:$0xf]  ;;  %v1967_v51 = vld [vmem:[#allocation8 + $0x1c0] sm:$0xf0]  ;;  %v2021_v34 = vld [vmem:[#allocation10 + $0x70] sm:$0xff] }
  0xb3   :  { %v1541_v52 = vor.u32 %v1940_v43, %v1540_v41  ;;  %v2003_v54 = vld [vmem:[#allocation8 + $0x2e0] sm:$0xf0]  ;;  %v1528_v55 = vld [vmem:[#allocation8 + $0xc8] sm:$0xf]  ;;  %v2018_v39 = vld [vmem:[#allocation10 + $0x58] sm:$0xff] }
  0xb4   :  { %v2301_v1 = vpack.c.bf16 %v238_v57, %v234_v50  ;;  %900 = vmatmul.bf16.vlgmr.msra.gmra.mxu0 %v2299_v61  ;;  %v1648_v50 = vld [vmem:[#allocation8 + $0x1b8] sm:$0xf]  ;;  %v1457_v57 = vor.u32 %v1919_v49, %v1456_v47  ;;  %v1793_v60 = vor.u32 %v2003_v54, %v1792_v53  ;;  %v2028_v49 = vld [vmem:[#allocation10 + $0xa8] sm:$0xff] }
  0xb5   :  { %v227_v5 = vpop.f32.mrf.mxu3  ;;  %1004 = vmatpush.bf16.msra.mxu0 %v1517_v58  ;;  %v1649_v58 = vor.u32 %v1967_v51, %v1648_v50  ;;  %v2030_v40 = vld [vmem:[#allocation10 + $0xb8] sm:$0xff]  ;;  %v2015_v51 = vld [vmem:[#allocation10 + $0x40] sm:$0xff] }
  0xb6   :  { %1019 = vmatpush.bf16.msrb.mxu1 %v1601_v56  ;;  %928 = vmatmul.bf16.vlgmr.msrb.gmra.mxu2 %v2301_v1  ;;  %v228_v26 = vadd.f32 %v227_v5, %v122_v14  ;;  %v1937_v56 = vld [vmem:[#allocation8 + $0xd0] sm:$0xf0] }
  0xb7   :  { %1032 = vmatpush.bf16.msrb.mxu2 %v1709_v62  ;;  %v1916_v62 = vld [vmem:[#allocation8 + $0x28] sm:$0xf0]  ;;  %v1529_v2 = vor.u32 %v1937_v56, %v1528_v55 }
  0xb8   :  { %v235_v37 = vmax.f32 %v228_v26, 0.0  ;;  %v1445_v5 = vor.u32 %v1916_v62, %v1444_v59  ;;  %v1988_v26 = vld [vmem:[#allocation8 + $0x268] sm:$0xf0]  ;;  %v2025_v62 = vld [vmem:[#allocation10 + $0x90] sm:$0xff] }
  0xb9   :  { %1005 = vmatpush.bf16.msra.mxu0 %v1505_v6  ;;  %v1637_v6 = vor.u32 %v1964_v0, %v1636_v63 }
  0xba   :  { %1020 = vmatpush.bf16.msrb.mxu1 %v1589_v4  ;;  %v2000_v4 = vld [vmem:[#allocation8 + $0x2c8] sm:$0xf0] }
  0xbb   :  { %1033 = vmatpush.bf16.msrb.mxu2 %v1697_v9  ;;  %v1781_v8 = vor.u32 %v2000_v4, %v1780_v3  ;;  %v1913_v9 = vld [vmem:[#allocation8 + $0x10] sm:$0xf0] }
  0xbd   :  { %v229_v28 = vpop.f32.mrf.mxu3  ;;  %1006 = vmatpush.bf16.msra.mxu0 %v1493_v16  ;;  %v1769_v16 = vor.u32 %v1997_v13, %v1768_v12  ;;  %v2023_v13 = vld [vmem:[#allocation10 + $0x80] sm:$0xff] }
  0xbe   :  { %1021 = vmatpush.bf16.msrb.mxu1 %v1577_v15  ;;  %v230_v31 = vadd.f32 %v229_v28, %v122_v14  ;;  %v1433_v14 = vor.u32 %v1913_v9, %v1432_v7  ;;  %v1625_v15 = vor.u32 %v1961_v11, %v1624_v10  ;;  %v1985_v28 = vld [vmem:[#allocation8 + $0x250] sm:$0xf0]  ;;  %v2024_v7 = vld [vmem:[#allocation10 + $0x88] sm:$0xff] }
  0xbf   :  { %1034 = vmatpush.bf16.msrb.mxu2 %v1685_v20  ;;  %v1757_v20 = vor.u32 %v1994_v19, %v1756_v17 }
  0xc0   :  { %v239_v38 = vmax.f32 %v230_v31, 0.0  ;;  %v2010_v31 = vld [vmem:[#allocation10 + $0x18] sm:$0xff] }
  0xc1   :  { %970 = vmatmul.bf16.vlgmr.msra.gmra.mxu1 %v2296_v42  ;;  %1007 = vmatpush.bf16.msra.mxu0 %v1481_v29 }
  0xc2   :  { %1022 = vmatpush.bf16.msrb.mxu1 %v1565_v27  ;;  %v2307_v44 = vpack.c.bf16 %v239_v38, %v235_v37  ;;  %v1720_v27 = vld [vmem:[#allocation8 + $0x248] sm:$0xf]  ;;  %v2007_v37 = vld [vmem:[#allocation10] sm:$0xff] }
  0xc3   :  { %1035 = vmatpush.bf16.msrb.mxu2 %v1673_v32  ;;  %v1721_v29 = vor.u32 %v1985_v28, %v1720_v27  ;;  %v2022_v32 = vld [vmem:[#allocation10 + $0x78] sm:$0xff]  ;;  %v2019_v38 = vld [vmem:[#allocation10 + $0x60] sm:$0xff] }
  0xc4   :  { %942 = vmatmul.bf16.vlgmr.msra.gmra.mxu3 %v2307_v44  ;;  %956 = vmatmul.bf16.vlgmr.msrb.gmra.mxu0 %v2299_v61 }
  0xc5   :  { %1008 = vmatpush.bf16.msra.mxu0 %v1469_v45  ;;  %1046 = vmatpush.bf16.msra.mxu3 %v1805_v48  ;;  %v2029_v45 = vld [vmem:[#allocation10 + $0xb0] sm:$0xff]  ;;  %v2016_v48 = vld [vmem:[#allocation10 + $0x48] sm:$0xff] }
  0xc6   :  { %1023 = vmatpush.bf16.msrb.mxu1 %v1553_v18  ;;  %984 = vmatmul.bf16.vlgmr.msra.gmra.mxu2 %v2301_v1 }
  0xc7   :  { %1036 = vmatpush.bf16.msrb.mxu2 %v1661_v46  ;;  %v2320_v46 = vld [vmem:[%s2338_s4] sm:$0x7] }
  0xc8   :  { %v374_v50 = vperm.slane %v2320_v46, 0  ;;  %v375_v9 = vperm.slane %v2320_v46, 1 }
  0xc9   :  { %1009 = vmatpush.bf16.msra.mxu0 %v1457_v57  ;;  %1047 = vmatpush.bf16.msra.mxu3 %v1793_v60  ;;  %v2026_v57 = vld [vmem:[#allocation10 + $0x98] sm:$0xff] }
  0xca   :  { %1024 = vmatpush.bf16.msrb.mxu1 %v1541_v52  ;;  %v2027_v52 = vld [vmem:[#allocation10 + $0xa0] sm:$0xff] }
  0xcb   :  { %1037 = vmatpush.bf16.msrb.mxu2 %v1649_v58 }
  0xcd   :  { %1010 = vmatpush.bf16.msra.mxu0 %v1445_v5  ;;  %1048 = vmatpush.bf16.msra.mxu3 %v1781_v8 }
  0xce   :  { %1025 = vmatpush.bf16.msrb.mxu1 %v1529_v2 }
  0xcf   :  { %1038 = vmatpush.bf16.msrb.mxu2 %v1637_v6 }
  0xd1   :  { %1026 = vmatmul.bf16.vlgmr.msrb.gmra.mxu1 %v2296_v42  ;;  %1011 = vmatpush.bf16.msra.mxu0 %v1433_v14  ;;  %v1733_v42 = vor.u32 %v1988_v26, %v1732_v25 }
  0xd2   :  { %1049 = vmatpush.bf16.msra.mxu3 %v1769_v16  ;;  %1279 = vmatpush.bf16.msra.mxu1 %v2022_v32 }
  0xd3   :  { %1039 = vmatpush.bf16.msrb.mxu2 %v1625_v15 }
  0xd4   :  { %998 = vmatmul.bf16.vlgmr.msrb.gmra.mxu3 %v2307_v44  ;;  %1012 = vmatmul.bf16.vlgmr.msra.gmra.mxu0 %v2299_v61  ;;  %v2012_v61 = vld [vmem:[#allocation10 + $0x28] sm:$0xff] }
  0xd5   :  { %1265 = vmatpush.bf16.msrb.mxu0 %v2014_v30 }
  0xd6   :  { %1040 = vmatmul.bf16.vlgmr.msrb.gmra.mxu2 %v2301_v1  ;;  %1050 = vmatpush.bf16.msra.mxu3 %v1757_v20  ;;  %v2011_v1 = vld [vmem:[#allocation10 + $0x20] sm:$0xff] }
  0xd7   :  { %1280 = vmatpush.bf16.msra.mxu1 %v2021_v34  ;;  %1293 = vmatpush.bf16.msra.mxu2 %v2030_v40 }
  0xd9   :  { %1266 = vmatpush.bf16.msrb.mxu0 %v2013_v23 }
  0xda   :  { %1051 = vmatpush.bf16.msra.mxu3 %v1745_v24 }
  0xdb   :  { %1281 = vmatpush.bf16.msra.mxu1 %v2020_v36  ;;  %1294 = vmatpush.bf16.msra.mxu2 %v2029_v45 }
  0xdd   :  { %1267 = vmatpush.bf16.msrb.mxu0 %v2012_v61 }
  0xde   :  { %1052 = vmatpush.bf16.msra.mxu3 %v1733_v42 }
  0xdf   :  { %1282 = vmatpush.bf16.msra.mxu1 %v2019_v38  ;;  %1295 = vmatpush.bf16.msra.mxu2 %v2028_v49  ;;  %v2045_v49 = vld [vmem:[%s2340_s6] ss:$0 sm:$0xff]  ;;  %s2218_s6 = smov [#allocation11]  }
  0xe1   :  { %1268 = vmatpush.bf16.msrb.mxu0 %v2011_v1  ;;  %v376_v1 = vperm.slane %v2320_v46, 2 }
  0xe2   :  { %1053 = vmatpush.bf16.msra.mxu3 %v1721_v29 }
  0xe3   :  { %1283 = vmatpush.bf16.msra.mxu1 %v2018_v39  ;;  %1296 = vmatpush.bf16.msra.mxu2 %v2027_v52 }
  0xe5   :  { %1054 = vmatmul.bf16.vlgmr.msra.gmra.mxu3 %v2307_v44  ;;  %1269 = vmatpush.bf16.msrb.mxu0 %v2010_v31  ;;  %v2017_v44 = vld [vmem:[#allocation10 + $0x50] sm:$0xff] }
  0xe7   :  { %1284 = vmatpush.bf16.msra.mxu1 %v2017_v44  ;;  %1297 = vmatpush.bf16.msra.mxu2 %v2026_v57 }
  0xe9   :  { %1270 = vmatpush.bf16.msrb.mxu0 %v2009_v33 }
  0xeb   :  { %1285 = vmatpush.bf16.msra.mxu1 %v2016_v48  ;;  %1298 = vmatpush.bf16.msra.mxu2 %v2025_v62 }
  0xed   :  { %1271 = vmatpush.bf16.msrb.mxu0 %v2008_v35 }
  0xef   :  { %1286 = vmatpush.bf16.msra.mxu1 %v2015_v51  ;;  %1299 = vmatpush.bf16.msra.mxu2 %v2024_v7 }
  0xf1   :  { %1272 = vmatpush.bf16.msrb.mxu0 %v2007_v37 }
  0xf3   :  { %1300 = vmatpush.bf16.msra.mxu2 %v2023_v13 }
 0x12e   :  { %v915_v41 = vpop.f32.mrf.mxu1 }
 0x131   :  { %v901_v18 = vpop.f32.mrf.mxu0 }
 0x132   :  { %v902_v55 = vadd.f32 %v901_v18, %v374_v50 }
 0x134   :  { %v916_v60 = vadd.f32 %v915_v41, %v902_v55  ;;  %v2046_v55 = vld [vmem:[%s2341_s7] ss:$0 sm:$0xff]  ;;  %s1365_s7 = sshll.u32 %s2218_s6, 4  ;;  %s1366_s7 = int_to_ptr.vmem [resolvable:$true] %s1365_s7 }
 0x136   :  { %v917_v53 = vpop.f32.mrf.mxu1 }
 0x139   :  { %v929_v43 = vpop.f32.mrf.mxu2  ;;  %v903_v47 = vpop.f32.mrf.mxu0 }
 0x13a   :  { %v904_v58 = vadd.f32 %v903_v47, %v374_v50  ;;  %v930_v63 = vadd.f32 %v929_v43, %v916_v60 }
 0x13c   :  { %v918_v0 = vadd.f32 %v917_v53, %v904_v58 }
 0x13e   :  { %v971_v2 = vpop.f32.mrf.mxu1 }
 0x141   :  { %v931_v54 = vpop.f32.mrf.mxu2  ;;  %v957_v59 = vpop.f32.mrf.mxu0 }
 0x142   :  { %v932_v3 = vadd.f32 %v931_v54, %v918_v0  ;;  %v958_v15 = vadd.f32 %v957_v59, %v375_v9 }
 0x144   :  { %v972_v21 = vadd.f32 %v971_v2, %v958_v15 }
 0x146   :  { %v973_v19 = vpop.f32.mrf.mxu1 }
 0x147   :  { %v943_v56 = vpop.f32.mrf.mxu3 }
 0x148   :  { %v944_v4 = vadd.f32 %v943_v56, %v930_v63 }
 0x149   :  { %v985_v5 = vpop.f32.mrf.mxu2  ;;  %v959_v12 = vpop.f32.mrf.mxu0 }
 0x14a   :  { %v1060_v10 = vmax.f32 %v944_v4, 0.0  ;;  %v960_v17 = vadd.f32 %v959_v12, %v375_v9  ;;  %v986_v22 = vadd.f32 %v985_v5, %v972_v21 }
 0x14c   :  { %v974_v24 = vadd.f32 %v973_v19, %v960_v17 }
 0x14e   :  { %v1027_v23 = vpop.f32.mrf.mxu1 }
 0x14f   :  { %v945_v6 = vpop.f32.mrf.mxu3 }
 0x150   :  { %v946_v8 = vadd.f32 %v945_v6, %v932_v3 }
 0x151   :  { %v987_v20 = vpop.f32.mrf.mxu2  ;;  %v1013_v25 = vpop.f32.mrf.mxu0 }
 0x152   :  { %v1063_v11 = vmax.f32 %v946_v8, 0.0  ;;  %v988_v26 = vadd.f32 %v987_v20, %v974_v24  ;;  %v1014_v33 = vadd.f32 %v1013_v25, %v376_v1 }
 0x154   :  { %v1066_v14 = vpack.c.bf16 %v1063_v11, %v1060_v10  ;;  %v1028_v36 = vadd.f32 %v1027_v23, %v1014_v33 }
 0x156   :  { %1273 = vmatmul.bf16.vlgmr.msrb.gmra.mxu0 %v1066_v14  ;;  %v1029_v37 = vpop.f32.mrf.mxu1 }
 0x157   :  { %v999_v16 = vpop.f32.mrf.mxu3 }
 0x158   :  { %v1000_v42 = vadd.f32 %v999_v16, %v986_v22 }
 0x159   :  { %v1041_v61 = vpop.f32.mrf.mxu2  ;;  %v1015_v32 = vpop.f32.mrf.mxu0 }
 0x15a   :  { %v1061_v29 = vmax.f32 %v1000_v42, 0.0  ;;  %v1016_v35 = vadd.f32 %v1015_v32, %v376_v1  ;;  %v1042_v18 = vadd.f32 %v1041_v61, %v1028_v36 }
 0x15c   :  { %v1030_v39 = vadd.f32 %v1029_v37, %v1016_v35 }
 0x15f   :  { %v1001_v27 = vpop.f32.mrf.mxu3 }
 0x160   :  { %v1002_v28 = vadd.f32 %v1001_v27, %v988_v26 }
 0x161   :  { %v1043_v38 = vpop.f32.mrf.mxu2 }
 0x162   :  { %v1064_v30 = vmax.f32 %v1002_v28, 0.0  ;;  %v1044_v40 = vadd.f32 %v1043_v38, %v1030_v39 }
 0x164   :  { %v1067_v31 = vpack.c.bf16 %v1064_v30, %v1061_v29 }
 0x166   :  { %1287 = vmatmul.bf16.vlgmr.msra.gmra.mxu1 %v1067_v31 }
 0x168   :  { %v1055_v34 = vpop.f32.mrf.mxu3 }
 0x169   :  { %v1056_v41 = vadd.f32 %v1055_v34, %v1042_v18 }
 0x16b   :  { %v1062_v45 = vmax.f32 %v1056_v41, 0.0 }
 0x170   :  { %v1057_v43 = vpop.f32.mrf.mxu3 }
 0x171   :  { %v1058_v44 = vadd.f32 %v1057_v43, %v1044_v40 }
 0x173   :  { %v1065_v47 = vmax.f32 %v1058_v44, 0.0 }
 0x175   :  { %v1068_v48 = vpack.c.bf16 %v1065_v47, %v1062_v45 }
 0x177   :  { %1301 = vmatmul.bf16.vlgmr.msra.gmra.mxu2 %v1068_v48 }
 0x1d3   :  { %v1274_v46 = vpop.f32.mrf.mxu0 }
 0x1d4   :  { %v1275_v51 = vadd.f32 %v2045_v49, %v1274_v46 }
 0x1db   :  { %v1276_v56 = vpop.f32.mrf.mxu0 }
 0x1dc   :  { %v1277_v59 = vadd.f32 %v2045_v49, %v1276_v56 }
 0x1e3   :  { %v1288_v50 = vpop.f32.mrf.mxu1 }
 0x1e4   :  { %v1289_v52 = vadd.f32 %v1288_v50, %v1275_v51 }
 0x1eb   :  { %v1290_v58 = vpop.f32.mrf.mxu1 }
 0x1ec   :  { %v1291_v62 = vadd.f32 %v1290_v58, %v1277_v59 }
 0x1fa   :  { %v1302_v53 = vpop.f32.mrf.mxu2 }
 0x1fb   :  { %v1303_v54 = vadd.f32 %v1302_v53, %v1289_v52 }
 0x1fd   :  { %v1307_v57 = vmax.f32 %v1303_v54, 0.0 }
 0x1ff   :  { %v1313_v60 = vadd.f32 %v2046_v55, %v1307_v57 }
 0x201   :  { %1315 = vmax.xlane.f32.xlu0 %v1313_v60 }
 0x202   :  { %v1304_v63 = vpop.f32.mrf.mxu2 }
 0x203   :  { %v1305_v0 = vadd.f32 %v1304_v63, %v1291_v62 }
 0x205   :  { %v1308_v2 = vmax.f32 %v1305_v0, 0.0 }
 0x207   :  { %v1314_v3 = vadd.f32 %v2046_v55, %v1308_v2 }
 0x209   :  { %1317 = vmax.xlane.f32.xlu0 %v1314_v3 }
 0x274   :  { %v1316_v4 = vpop.xlane.xlu0 %1315 }
 0x275   :  { %v1319_v5 = vsub.f32 %v1313_v60, %v1316_v4 }
 0x277   :  { %v1321_v6 = vmul.f32 1.442695, %v1319_v5 }
 0x279   :  { %2047 = vpow2.f32 %v1321_v6 }
 0x27c   :  { %v1318_v7 = vpop.xlane.xlu0 %1317 }
 0x27d   :  { %v1320_v8 = vsub.f32 %v1314_v3, %v1318_v7 }
 0x27f   :  { %v2048_v9 = vpop.eup %2047  ;;  %v1323_v10 = vmul.f32 1.442695, %v1320_v8 }
 0x280   :  { %1325 = vadd.xlane.f32.xlu1 %v2048_v9 }
 0x281   :  { %2049 = vpow2.f32 %v1323_v10 }
 0x287   :  { %v2050_v11 = vpop.eup %2049 }
 0x288   :  { %1327 = vadd.xlane.f32.xlu1 %v2050_v11 }
 0x2f3   :  { %v1326_v12 = vpop.xlane.xlu1 %1325 }
 0x2f4   :  { %2051 = vrcp.f32 %v1326_v12  ;;  %v1340_v17 = vand.u32 2147483648, %v1326_v12  ;;  %v1338_v20 = vand.u32 2147483647, %v1326_v12  ;;  %vm1334_vm2 = vweird.f32 %v1326_v12 }
 0x2f6   :  { %v1341_v24 = vor.u32 1.1754944e-38, %v1340_v17  ;;  %vm1339_vm4 = vcmp.eq.f32.partialorder %v1338_v20, 8.507059e+37 }
 0x2fa   :  { %v2052_v13 = vpop.eup %2051 }
 0x2fb   :  { %v1330_v14 = vmul.f32 %v2052_v13, %v1326_v12  ;;  %v1328_v15 = vpop.xlane.xlu1 %1327  ;;  %vm1335_vm1 = vweird.f32 %v2052_v13 }
 0x2fc   :  { %2053 = vrcp.f32 %v1328_v15  ;;  %vm1336_vm3 = vmor %vm1334_vm2, %vm1335_vm1  ;;  %v1354_v29 = vand.u32 2147483648, %v1328_v15  ;;  %v1352_v23 = vand.u32 2147483647, %v1328_v15  ;;  %vm1348_vm6 = vweird.f32 %v1328_v15 }
 0x2fd   :  { %v1331_v16 = vsub.f32 1.0, %v1330_v14 }
 0x2fe   :  { %v1355_v1 = vor.u32 1.1754944e-38, %v1354_v29  ;;  %vm1353_vm8 = vcmp.eq.f32.partialorder %v1352_v23, 8.507059e+37 }
 0x2ff   :  { %v1332_v19 = vmul.f32 %v2052_v13, %v1331_v16 }
 0x301   :  { %v1333_v21 = vadd.f32 %v2052_v13, %v1332_v19 }
 0x302   :  { %v2054_v22 = vpop.eup %2053 }
 0x303   :  { %v1337_v25 = vsel %vm1336_vm3, %v2052_v13, %v1333_v21  ;;  %v1344_v26 = vmul.f32 %v2054_v22, %v1328_v15  ;;  %vm1349_vm5 = vweird.f32 %v2054_v22 }
 0x304   :  { %v1342_v42 = vsel %vm1339_vm4, %v1341_v24, %v1337_v25  ;;  %vm1350_vm7 = vmor %vm1348_vm6, %vm1349_vm5 }
 0x305   :  { %v1357_v27 = vmul.f32 %v2048_v9, %v1342_v42  ;;  %v1345_v28 = vsub.f32 1.0, %v1344_v26 }
 0x307   :  { %1359 = vst [vmem:[#allocation11] sm:$0xff] %v1357_v27  ;;  %v1346_v30 = vmul.f32 %v2054_v22, %v1345_v28 }
 0x309   :  { %v1347_v61 = vadd.f32 %v2054_v22, %v1346_v30 }
 0x30b   :  { %v1351_v31 = vsel %vm1350_vm7, %v2054_v22, %v1347_v61 }
 0x30c   :  { %v1356_v32 = vsel %vm1353_vm8, %v1355_v1, %v1351_v31 }
 0x30d   :  { %v1358_v33 = vmul.f32 %v2050_v11, %v1356_v32 }
 0x30f   :  { %1360 = vst [vmem:[#allocation11 + $0x8] sm:$0xff] %v1358_v33 }
 0x310   :  { %1373 = dma.vmem_to_hbm [thread:$0]  %s1366_s7, 256, %s1368_s16, [#allocation4], %s2219_s17, %s2219_s17, %s2220_s18  }
 0x311   :  { %2205 = dma.done.wait [#allocation4], 256  }
 0x312   :  { %2206 = vsyncadd [#allocation4], 4294967040 }
 0x313   :  { %1378 = vsyncpa [#allocation3], 1 }
 0x314   :  { %1379 = vsyncpa [#allocation6], 1 }
 0x315   :  { %1380 = vsyncpa [#allocation9], 1 }
 0x316   :  { %1381 = vsyncpa [#allocation4], 1 }

</bundles_post_ra>
